<compile_context>
chip_gen: v6e
topology: v6e:2x2x1
jax: 0.10.0
libtpu: 0.0.40
codegen_flags: <defaults>
</compile_context>

<pallas_src>
import numpy as np
import jax
import jax.numpy as jnp
from jax.experimental import pallas as pl
from jax.experimental.pallas import tpu as pltpu


def _dma_copy_kernel(x_hbm, o_hbm, sem):
    """Identity copy of the whole array with one HBM->HBM DMA."""
    cp = pltpu.make_async_copy(x_hbm, o_hbm, sem)
    cp.start()
    cp.wait()


def expand_temporal_dim(x_seq, T):
    """Pallas implementation of ExpandTemporalDim.forward: [T*B, ...] -> [T, B, ...]."""
    assert x_seq.shape[0] % T == 0, "leading dim must be divisible by T"
    out_shape = (T, x_seq.shape[0] // T) + tuple(x_seq.shape[1:])

    # The reshape itself is free metadata (row-major element order unchanged),
    # exactly matching torch.Tensor.view semantics.  The Pallas call below is
    # a single HBM->HBM DMA identity copy — the cheapest possible kernel for
    # an op with zero arithmetic.
    x_view = jnp.reshape(x_seq, out_shape)

    if x_view.size == 0:
        # TODO(synk): nothing to DMA for empty tensors; the free view is the result.
        return x_view

    nbytes = x_view.size * jnp.dtype(x_view.dtype).itemsize

    return pl.pallas_call(
        _dma_copy_kernel,
        out_shape=jax.ShapeDtypeStruct(out_shape, x_view.dtype),
        in_specs=[pl.BlockSpec(memory_space=pl.ANY)],
        out_specs=pl.BlockSpec(memory_space=pl.ANY),
        scratch_shapes=[pltpu.SemaphoreType.DMA],
        cost_estimate=pl.CostEstimate(
            flops=0, transcendentals=0, bytes_accessed=2 * nbytes),
    )(x_view)


if __name__ == "__main__":
    key = jax.random.PRNGKey(0)
    # Shapes implied by the module: x_seq has leading dim T*B.
    T, B, seq, hidden = 4, 2, 8, 32
    x_seq = jax.random.normal(key, (T * B, seq, hidden), dtype=jnp.float32)

    out = expand_temporal_dim(x_seq, T)
    out = jax.block_until_ready(out)

    # Reference: exact semantics of torch.Tensor.view([T, B, ...]).
    ref = x_seq.reshape((T, B, seq, hidden))
    assert out.shape == (T, B, seq, hidden)
    np.testing.assert_allclose(np.asarray(out), np.asarray(ref), rtol=0, atol=0)

    print("KERNEL_OK")
</pallas_src>

<mosaic_0001>
module attributes {stable_mosaic.version = 11 : i64} {
  func.func @_dma_copy_kernel(%arg0: memref<4x2x8x32xf32, #tpu.memory_space<any>>, %arg1: memref<4x2x8x32xf32, #tpu.memory_space<any>>, %arg2: memref<!tpu.dma_semaphore, #tpu.memory_space<semaphore_mem>>) attributes {dimension_semantics = [], scalar_prefetch = 0 : i64, scratch_operands = 1 : i64, tpu.core_type = #tpu.core_type<tc>} {
    tpu.enqueue_dma source(%arg0 : memref<4x2x8x32xf32, #tpu.memory_space<any>>) target(%arg1 : memref<4x2x8x32xf32, #tpu.memory_space<any>>) target_semaphore(%arg2 : memref<!tpu.dma_semaphore, #tpu.memory_space<semaphore_mem>>)
    tpu.wait_dma2 semaphore(%arg2 : memref<!tpu.dma_semaphore, #tpu.memory_space<semaphore_mem>>) src(%arg0 : memref<4x2x8x32xf32, #tpu.memory_space<any>>) dst(%arg1 : memref<4x2x8x32xf32, #tpu.memory_space<any>>)
    return
  }
}

</mosaic_0001>

<bundles_post_ra>
// kernel: tpu_custom_call.1
= control target key start
LH: loop header
LB: loop body
LE: loop exit
PB: predicated region body
PF: predicated region fallthrough
CT: control target
= control target key end

     0   :  { %s30_s6 = smov [#allocation2]   ;;  %s31_s7 = smov 131072   ;;  %s49_s0 = inlined_call_operand.hbm [shape: f32[4,2,8,32], index: 0, kind: input, shape index: {}]   ;;  %s50_s1 = inlined_call_operand.hbm [shape: f32[4,2,8,32], index: 1, kind: output, shape index: {}]  }
   0x1   :  { %s32_s8 = smov 0  }
   0x2   :  { %12 = dma.general %s49_s0, 1024, %s50_s1, %s30_s6, %s31_s7, [#allocation4], %s32_s8, 0  }
   0x3   :  { %28 = dma.done.wait [#allocation2], 1024 }
   0x4   :  { %29 = vsyncadd [#allocation2], 4294966272 }
   0x5   :  { %18 = vsyncmov [#allocation2] }
   0x8   :  { %s19_s13 = vpop.sfrf %18 }
   0x9   :  { %p24_p0 = scmp.ne.s32.totalorder %s19_s13, 0 }
   0xb   :  { %23 = shalt.err (%p24_p0)  }

</bundles_post_ra>
